<compile_context>
chip_gen: v7x
topology: tpu7x:2x2x1
jax: 0.10.0
libtpu: 0.0.40
codegen_flags: <defaults>
</compile_context>

<pallas_src>
import functools

import jax
import jax.numpy as jnp
from jax import lax
from jax.experimental import pallas as pl
from jax.experimental.pallas import tpu as pltpu

LN_EPS = 1e-5
NEG_BIG = -1e30


def _round_up(n, m):
    return (n + m - 1) // m * m


def abmil_kernel(x_ref, w_ref,
                 we_ref, be_ref, lng_ref, lnb_ref,
                 wf_ref, bf_ref, wa2_ref, ba2_ref,
                 enc_ref, m_ref, z_ref, acc_ref,
                 *, n_valid, tile_n, tiles_per_chunk, d_att, compute_dtype):
    c = pl.program_id(0)          # chunk (split across TCs on megacore parts)
    i = pl.program_id(1)          # tile within the chunk (sequential, carries state)

    @pl.when(i == 0)
    def _init():
        m_ref[...] = jnp.full(m_ref.shape, NEG_BIG, m_ref.dtype)
        z_ref[...] = jnp.zeros(z_ref.shape, z_ref.dtype)
        acc_ref[...] = jnp.zeros(acc_ref.shape, acc_ref.dtype)

    # Global (unclamped) row range of this tile; rows >= n_valid are padding
    # (ragged last block and clamped duplicate steps) and are masked out.
    row0 = (c * tiles_per_chunk + i) * tile_n
    rows = row0 + lax.broadcasted_iota(jnp.int32, (tile_n, 1), 0)     # (T, 1)
    cols = row0 + lax.broadcasted_iota(jnp.int32, (1, tile_n), 1)     # (1, T)
    row_valid = rows < n_valid
    col_valid = cols < n_valid

    # --- encoder: Linear(L,L) -> Dropout(identity at eval) -> LayerNorm(L) ---
    x = x_ref[...].astype(compute_dtype)                              # (T, L)
    h = jnp.dot(x, we_ref[...].astype(compute_dtype),
                preferred_element_type=jnp.float32) + be_ref[...]     # (T, L) f32
    mu = jnp.mean(h, axis=-1, keepdims=True)
    var = jnp.mean((h - mu) * (h - mu), axis=-1, keepdims=True)
    hn = (h - mu) * lax.rsqrt(var + LN_EPS) * lng_ref[...] + lnb_ref[...]
    hn = jnp.where(row_valid, hn, 0.0)        # zero padded rows (kills NaN garbage)
    hn_c = hn.astype(compute_dtype)

    # --- fused [attention-hidden ; encoder-classifier] matmul ---
    # (D+C, L) contracted with (T, L) on L  ->  (D+C, T): lane-dense over instances.
    fused = lax.dot_general(wf_ref[...].astype(compute_dtype), hn_c,
                            dimension_numbers=(((1,), (1,)), ((), ())),
                            preferred_element_type=jnp.float32) + bf_ref[...]
    a1_t = jnp.tanh(fused[:d_att, :])                                 # (D, T)
    enc_ref[...] = fused[d_att:, :]                                   # (C, T) lane-dense store

    # --- attention score row (1, T) ---
    s = jnp.dot(wa2_ref[...].astype(compute_dtype), a1_t.astype(compute_dtype),
                preferred_element_type=jnp.float32) + ba2_ref[...]    # (1, T)
    s = jnp.where(col_valid, s, NEG_BIG)

    # --- online (flash-style) softmax + weighted pooling on dense rows ---
    m_prev = m_ref[0]                                                 # (1, 1)
    m_new = jnp.maximum(m_prev, jnp.max(s, axis=-1, keepdims=True))
    scale = jnp.exp(m_prev - m_new)
    p = jnp.exp(s - m_new)                                            # (1, T)
    w_row = jnp.where(col_valid, w_ref[...].astype(jnp.float32), 0.0)  # (1, T)
    pw = p * w_row
    z_ref[0] = z_ref[0] * scale + jnp.sum(p, axis=-1, keepdims=True)
    acc_ref[0] = acc_ref[0] * scale + jnp.dot(pw.astype(compute_dtype), hn_c,
                                              preferred_element_type=jnp.float32)
    m_ref[0] = m_new


def _vmem_limit_bytes(tile_n, l, d, c_cls, x_itemsize, cd_itemsize):
    """Lane/sublane-padding-aware VMEM estimate (pipeline buffers + intermediates)."""
    lane = lambda v: _round_up(v, 128)
    sub = lambda v: _round_up(v, 8)
    pipeline = 2 * tile_n * (lane(l) * x_itemsize   # x block (double buffered, lane padded)
                             + sub(1) * 4           # (1, T) weight row block
                             + sub(c_cls) * 4)      # (C, T) enc output block
    interm = tile_n * (2 * lane(l) * 4              # h, hn (f32, lane padded)
                       + lane(l) * cd_itemsize      # hn cast copy
                       + sub(d + c_cls) * (4 + cd_itemsize)   # fused / a1
                       + 8 * 8 * 4)                 # score / p / pw / mask rows
    est = pipeline + interm + (2 << 20)             # params + slack
    return int(min(56 << 20, max(24 << 20, 2 * est)))


def stable_abmil_forward(x, weight, params, *, tile_n=4096, num_chunks=2,
                         compute_dtype=jnp.float32):
    """x: (N, L) instance features, weight: (N, 1). Returns (y:(1,C), enc:(N,C))."""
    f32 = jnp.float32
    N, L = x.shape
    D = params["wa1"].shape[1]
    C = params["wec"].shape[1]

    # --- tiling (TILE_N is a lane multiple; tiny bags padded up to one lane tile) ---
    TILE_N = max(128, (int(tile_n) // 128) * 128)
    N_in = max(N, 128)
    TILE_N = min(TILE_N, _round_up(N_in, 128))
    if N_in != N:                                   # only for bags smaller than 128 rows
        x = jnp.pad(x, ((0, N_in - N), (0, 0)))
        w_row = jnp.pad(weight.reshape(1, -1), ((0, 0), (0, N_in - N)))
    else:                                           # no full-array repack for big bags
        w_row = weight.reshape(1, -1)

    num_tiles = pl.cdiv(N_in, TILE_N)
    NC = max(1, min(int(num_chunks), num_tiles))    # chunks (parallel across TCs on v7x)
    TPC = pl.cdiv(num_tiles, NC)
    N_out = NC * TPC * TILE_N                       # padded lane-dense enc width
    last_tile = num_tiles - 1

    # --- parameters (small, resident) ---
    we = params["we"].astype(f32)                                    # (L, L)
    be = params["be"].reshape(1, L).astype(f32)
    lng = params["lng"].reshape(1, L).astype(f32)
    lnb = params["lnb"].reshape(1, L).astype(f32)
    # fused [wa1^T ; wec^T] : (D + C, L), biases as a (D + C, 1) column
    wf = jnp.concatenate([params["wa1"].astype(f32).T,
                          params["wec"].astype(f32).T], axis=0)
    bf = jnp.concatenate([params["ba1"].reshape(D, 1).astype(f32),
                          params["bec"].reshape(C, 1).astype(f32)], axis=0)
    wa2_row = params["wa2"].astype(f32).T                            # (1, D)
    ba2 = params["ba2"].reshape(1, 1).astype(f32)

    def tile_idx(c, i):                      # clamp keeps input DMAs in bounds
        return jnp.minimum(c * TPC + i, last_tile)

    const = lambda shape: pl.BlockSpec(shape, lambda c, i: (0, 0))
    in_specs = [
        pl.BlockSpec((TILE_N, L), lambda c, i: (tile_idx(c, i), 0)),   # x tile
        pl.BlockSpec((1, TILE_N), lambda c, i: (0, tile_idx(c, i))),   # weight row
        const((L, L)), const((1, L)), const((1, L)), const((1, L)),
        const((D + C, L)), const((D + C, 1)), const((1, D)), const((1, 1)),
    ]
    out_specs = (
        pl.BlockSpec((C, TILE_N), lambda c, i: (0, c * TPC + i)),      # enc^T tile
        pl.BlockSpec((1, 1, 1), lambda c, i: (c, 0, 0)),               # running max
        pl.BlockSpec((1, 1, 1), lambda c, i: (c, 0, 0)),               # running exp-sum
        pl.BlockSpec((1, 1, L), lambda c, i: (c, 0, 0)),               # pooled accumulator
    )
    out_shape = (jax.ShapeDtypeStruct((C, N_out), f32),
                 jax.ShapeDtypeStruct((NC, 1, 1), f32),
                 jax.ShapeDtypeStruct((NC, 1, 1), f32),
                 jax.ShapeDtypeStruct((NC, 1, L), f32))

    cd_itemsize = jnp.dtype(compute_dtype).itemsize
    vmem_limit = _vmem_limit_bytes(TILE_N, L, D, C, x.dtype.itemsize, cd_itemsize)

    rows_total = N_out
    cost = pl.CostEstimate(
        flops=int(2 * rows_total * (L * L + L * (D + C) + D + L)),
        transcendentals=int(rows_total * (D + 2)),
        bytes_accessed=int(N_in * L * x.dtype.itemsize + N_in * w_row.dtype.itemsize
                           + C * N_out * 4 + NC * (L + 2) * 4
                           + 4 * (L * L + 3 * L + (D + C) * (L + 1) + D + 1)),
    )

    kernel = functools.partial(abmil_kernel, n_valid=N, tile_n=TILE_N,
                               tiles_per_chunk=TPC, d_att=D,
                               compute_dtype=compute_dtype)
    enc_t, m_part, z_part, acc_part = pl.pallas_call(
        kernel,
        out_shape=out_shape,
        grid_spec=pltpu.PrefetchScalarGridSpec(
            num_scalar_prefetch=0,
            grid=(NC, TPC),
            in_specs=in_specs,
            out_specs=out_specs,
        ),
        compiler_params=pltpu.CompilerParams(
            # chunks are independent (parallel -> both TCs on v7x); the tile axis
            # carries the online-softmax state and must stay sequential.
            dimension_semantics=("parallel", "arbitrary"),
            vmem_limit_bytes=vmem_limit,
        ),
        cost_estimate=cost,
    )(x, w_row, we, be, lng, lnb, wf, bf, wa2_row, ba2)

    # --- tiny JAX epilogue: combine per-chunk online-softmax partials, bag classifier ---
    m_glob = jnp.max(m_part)
    corr = jnp.exp(m_part - m_glob)                 # (NC, 1, 1)
    z = jnp.sum(z_part * corr)
    acc = jnp.sum(acc_part * corr, axis=0)          # (1, L)
    m_bag = acc / z                                 # (1, L) bag embedding
    y = m_bag @ params["wc"].astype(f32) + params["bc"].reshape(1, C).astype(f32)
    enc = jnp.transpose(enc_t[:, :N])               # back to (N, C)
    return y, enc


def reference_forward(x, weight, p):
    h = x @ p["we"] + p["be"]
    mu = h.mean(-1, keepdims=True)
    var = ((h - mu) ** 2).mean(-1, keepdims=True)
    hn = (h - mu) / jnp.sqrt(var + LN_EPS) * p["lng"] + p["lnb"]
    enc = hn @ p["wec"] + p["bec"]
    s = jnp.tanh(hn @ p["wa1"] + p["ba1"]) @ p["wa2"] + p["ba2"]
    attn = jax.nn.softmax(s, axis=0) * weight
    m = attn.T @ hn
    y = m @ p["wc"] + p["bc"]
    return y, enc


if __name__ == "__main__":
    # cfgs: feature_dim=32, num_classes=2, k=5 (registered buffers unused in forward)
    L, C = 32, 2
    D = L // 2
    f32 = jnp.float32

    key = jax.random.PRNGKey(0)
    ks = jax.random.split(key, 12)
    params = {
        # encoder embedding Linear(L, L)   (stored as (in, out) = W.T)
        "we": jax.random.normal(ks[0], (L, L), f32) * 0.1,
        "be": jax.random.normal(ks[1], (1, L), f32) * 0.1,
        # LayerNorm(L)
        "lng": jnp.ones((1, L), f32) + 0.05 * jax.random.normal(ks[2], (1, L), f32),
        "lnb": 0.05 * jax.random.normal(ks[3], (1, L), f32),
        # encoder classifier Linear(L, C)
        "wec": jax.random.normal(ks[4], (L, C), f32) * 0.1,
        "bec": jax.random.normal(ks[5], (1, C), f32) * 0.1,
        # attention Linear(L, D) -> Tanh -> Linear(D, 1)
        "wa1": jax.random.normal(ks[6], (L, D), f32) * 0.1,
        "ba1": jax.random.normal(ks[7], (1, D), f32) * 0.1,
        "wa2": jax.random.normal(ks[8], (D, 1), f32) * 0.1,
        "ba2": jax.random.normal(ks[9], (1, 1), f32) * 0.1,
        # bag classifier Linear(L * K, C)  (K = 1)
        "wc": jax.random.normal(ks[10], (L, C), f32) * 0.1,
        "bc": jax.random.normal(ks[11], (1, C), f32) * 0.1,
    }

    # Cases: tiny single-tile bag; multi-tile multi-chunk bag with ragged tail
    # (exercises clamped duplicate steps + partial-block masking); bf16 MXU operands.
    cases = [
        (8,   512, 2, jnp.float32,  2e-4),
        (300, 128, 2, jnp.float32,  2e-4),
        (300, 128, 2, jnp.bfloat16, 3e-2),
    ]
    for n, tn, nchunks, cdt, tol in cases:
        xk, wk = jax.random.split(jax.random.fold_in(jax.random.PRNGKey(42), n))
        x = jax.random.normal(xk, (n, L), f32)                 # bag of n instances (x[0] in torch)
        weight = jnp.abs(jax.random.normal(wk, (n, 1), f32))   # per-instance weight

        y, enc = stable_abmil_forward(x, weight, params, tile_n=tn,
                                      num_chunks=nchunks, compute_dtype=cdt)
        jax.block_until_ready((y, enc))

        y_ref, enc_ref = reference_forward(x, weight, params)
        assert jnp.allclose(y, y_ref, atol=tol, rtol=tol), (n, tn, cdt)
        assert jnp.allclose(enc, enc_ref, atol=tol, rtol=tol), (n, tn, cdt)

    print("KERNEL_OK")
</pallas_src>

<mosaic_0001>
module attributes {stable_mosaic.version = 11 : i64} {
  func.func @abmil_kernel(%arg0: i32, %arg1: i32, %arg2: memref<128x32xf32, #tpu.memory_space<vmem>>, %arg3: memref<1x128xf32, #tpu.memory_space<vmem>>, %arg4: memref<32x32xf32, #tpu.memory_space<vmem>>, %arg5: memref<1x32xf32, #tpu.memory_space<vmem>>, %arg6: memref<1x32xf32, #tpu.memory_space<vmem>>, %arg7: memref<1x32xf32, #tpu.memory_space<vmem>>, %arg8: memref<18x32xf32, #tpu.memory_space<vmem>>, %arg9: memref<18x1xf32, #tpu.memory_space<vmem>>, %arg10: memref<1x16xf32, #tpu.memory_space<vmem>>, %arg11: memref<1x1xf32, #tpu.memory_space<vmem>>, %arg12: memref<2x128xf32, #tpu.memory_space<vmem>>, %arg13: memref<1x1x1xf32, #tpu.memory_space<vmem>>, %arg14: memref<1x1x1xf32, #tpu.memory_space<vmem>>, %arg15: memref<1x1x32xf32, #tpu.memory_space<vmem>>) attributes {dimension_semantics = [#tpu.dimension_semantics<parallel>, #tpu.dimension_semantics<arbitrary>], iteration_bounds = array<i64: 1, 1>, scalar_prefetch = 0 : i64, scratch_operands = 0 : i64, tpu.core_type = #tpu.core_type<tc>, window_params = [{transform_indices = @transform_0, window_bounds = array<i64: 128, 32>}, {transform_indices = @transform_1, window_bounds = array<i64: 1, 128>}, {pipeline_mode = #tpu.pipeline_mode<synchronous>, transform_indices = @transform_2, window_bounds = array<i64: 32, 32>}, {pipeline_mode = #tpu.pipeline_mode<synchronous>, transform_indices = @transform_3, window_bounds = array<i64: 1, 32>}, {pipeline_mode = #tpu.pipeline_mode<synchronous>, transform_indices = @transform_4, window_bounds = array<i64: 1, 32>}, {pipeline_mode = #tpu.pipeline_mode<synchronous>, transform_indices = @transform_5, window_bounds = array<i64: 1, 32>}, {pipeline_mode = #tpu.pipeline_mode<synchronous>, transform_indices = @transform_6, window_bounds = array<i64: 18, 32>}, {pipeline_mode = #tpu.pipeline_mode<synchronous>, transform_indices = @transform_7, window_bounds = array<i64: 18, 1>}, {pipeline_mode = #tpu.pipeline_mode<synchronous>, transform_indices = @transform_8, window_bounds = array<i64: 1, 16>}, {pipeline_mode = #tpu.pipeline_mode<synchronous>, transform_indices = @transform_9, window_bounds = array<i64: 1, 1>}, {transform_indices = @transform_10, window_bounds = array<i64: 2, 128>}, {transform_indices = @transform_11, window_bounds = array<i64: 1, 1, 1>}, {transform_indices = @transform_12, window_bounds = array<i64: 1, 1, 1>}, {transform_indices = @transform_13, window_bounds = array<i64: 1, 1, 32>}]} {
    %c0_i32 = arith.constant 0 : i32
    %0 = arith.cmpi eq, %arg1, %c0_i32 : i32
    %1 = arith.extui %0 : i1 to i32
    %c0_i32_0 = arith.constant 0 : i32
    %2 = arith.cmpi ne, %1, %c0_i32_0 : i32
    scf.if %2 {
      %cst_54 = arith.constant -1.000000e+30 : f32
      %103 = vector.broadcast %cst_54 : f32 to vector<1x1x1xf32>
      %c0_55 = arith.constant 0 : index
      %c0_56 = arith.constant 0 : index
      %c0_57 = arith.constant 0 : index
      %104 = vector.load %arg13[%c0_55, %c0_56, %c0_57] : memref<1x1x1xf32, #tpu.memory_space<vmem>>, vector<1x1x1xf32>
      tpu.vector_store %arg13[%c0_55, %c0_56, %c0_57], %103 {strides = array<i32>} : memref<1x1x1xf32, #tpu.memory_space<vmem>>, vector<1x1x1xf32>,
      %cst_58 = arith.constant 0.000000e+00 : f32
      %105 = vector.broadcast %cst_58 : f32 to vector<1x1x1xf32>
      %c0_59 = arith.constant 0 : index
      %c0_60 = arith.constant 0 : index
      %c0_61 = arith.constant 0 : index
      %106 = vector.load %arg14[%c0_59, %c0_60, %c0_61] : memref<1x1x1xf32, #tpu.memory_space<vmem>>, vector<1x1x1xf32>
      tpu.vector_store %arg14[%c0_59, %c0_60, %c0_61], %105 {strides = array<i32>} : memref<1x1x1xf32, #tpu.memory_space<vmem>>, vector<1x1x1xf32>,
      %cst_62 = arith.constant 0.000000e+00 : f32
      %107 = vector.broadcast %cst_62 : f32 to vector<1x1x32xf32>
      %c0_63 = arith.constant 0 : index
      %c0_64 = arith.constant 0 : index
      %c0_65 = arith.constant 0 : index
      %108 = vector.load %arg15[%c0_63, %c0_64, %c0_65] : memref<1x1x32xf32, #tpu.memory_space<vmem>>, vector<1x1x32xf32>
      tpu.vector_store %arg15[%c0_63, %c0_64, %c0_65], %107 {strides = array<i32>} : memref<1x1x32xf32, #tpu.memory_space<vmem>>, vector<1x1x32xf32>,
    } else {
    }
    %c1_i32 = arith.constant 1 : i32
    %3 = arith.muli %arg0, %c1_i32 : i32
    %4 = arith.addi %3, %arg1 : i32
    %c128_i32 = arith.constant 128 : i32
    %5 = arith.muli %4, %c128_i32 : i32
    %6 = tpu.iota {dimensions = array<i32: 0>} : vector<128x1xi32>
    %7 = vector.broadcast %5 : i32 to vector<128x1xi32>
    %8 = arith.addi %7, %6 : vector<128x1xi32>
    %9 = tpu.iota {dimensions = array<i32: 1>} : vector<1x128xi32>
    %10 = vector.broadcast %5 : i32 to vector<1x128xi32>
    %11 = arith.addi %10, %9 : vector<1x128xi32>
    %c8_i32 = arith.constant 8 : i32
    %12 = vector.broadcast %c8_i32 : i32 to vector<128x1xi32>
    %13 = arith.cmpi slt, %8, %12 : vector<128x1xi32>
    %c8_i32_1 = arith.constant 8 : i32
    %14 = vector.broadcast %c8_i32_1 : i32 to vector<1x128xi32>
    %15 = arith.cmpi slt, %11, %14 : vector<1x128xi32>
    %c0 = arith.constant 0 : index
    %c0_2 = arith.constant 0 : index
    %16 = vector.load %arg2[%c0, %c0_2] : memref<128x32xf32, #tpu.memory_space<vmem>>, vector<128x32xf32>
    %c0_3 = arith.constant 0 : index
    %c0_4 = arith.constant 0 : index
    %17 = vector.load %arg4[%c0_3, %c0_4] : memref<32x32xf32, #tpu.memory_space<vmem>>, vector<32x32xf32>
    %cst = arith.constant dense<0.000000e+00> : vector<128x32xf32>
    %18 = tpu.matmul %16, %17, %cst {dimension_numbers = #tpu.dot_dimension_numbers<[1], [0], [0], [1], [0, 0, 1, 1], [], []>} : vector<128x32xf32>, vector<32x32xf32>, vector<128x32xf32> -> vector<128x32xf32>
    %c0_5 = arith.constant 0 : index
    %c0_6 = arith.constant 0 : index
    %19 = vector.load %arg5[%c0_5, %c0_6] : memref<1x32xf32, #tpu.memory_space<vmem>>, vector<1x32xf32>
    %20 = vector.broadcast %19 : vector<1x32xf32> to vector<128x32xf32>
    %21 = arith.addf %18, %20 : vector<128x32xf32>
    %cst_7 = arith.constant dense<0.000000e+00> : vector<128xf32>
    %22 = vector.multi_reduction <add>, %21, %cst_7 [1] : vector<128x32xf32> to vector<128xf32>
    %23 = vector.shape_cast %22 : vector<128xf32> to vector<128x1xf32>
    %cst_8 = arith.constant 3.200000e+01 : f32
    %24 = vector.broadcast %cst_8 : f32 to vector<128x1xf32>
    %25 = arith.divf %23, %24 : vector<128x1xf32>
    %26 = vector.broadcast %25 : vector<128x1xf32> to vector<128x32xf32>
    %27 = arith.subf %21, %26 : vector<128x32xf32>
    %28 = vector.broadcast %25 : vector<128x1xf32> to vector<128x32xf32>
    %29 = arith.subf %21, %28 : vector<128x32xf32>
    %30 = arith.mulf %27, %29 : vector<128x32xf32>
    %cst_9 = arith.constant dense<0.000000e+00> : vector<128xf32>
    %31 = vector.multi_reduction <add>, %30, %cst_9 [1] : vector<128x32xf32> to vector<128xf32>
    %32 = vector.shape_cast %31 : vector<128xf32> to vector<128x1xf32>
    %cst_10 = arith.constant 3.200000e+01 : f32
    %33 = vector.broadcast %cst_10 : f32 to vector<128x1xf32>
    %34 = arith.divf %32, %33 : vector<128x1xf32>
    %35 = vector.broadcast %25 : vector<128x1xf32> to vector<128x32xf32>
    %36 = arith.subf %21, %35 : vector<128x32xf32>
    %cst_11 = arith.constant 9.99999974E-6 : f32
    %37 = vector.broadcast %cst_11 : f32 to vector<128x1xf32>
    %38 = arith.addf %34, %37 : vector<128x1xf32>
    %39 = math.rsqrt %38 : vector<128x1xf32>
    %40 = vector.broadcast %39 : vector<128x1xf32> to vector<128x32xf32>
    %41 = arith.mulf %36, %40 : vector<128x32xf32>
    %c0_12 = arith.constant 0 : index
    %c0_13 = arith.constant 0 : index
    %42 = vector.load %arg6[%c0_12, %c0_13] : memref<1x32xf32, #tpu.memory_space<vmem>>, vector<1x32xf32>
    %43 = vector.broadcast %42 : vector<1x32xf32> to vector<128x32xf32>
    %44 = arith.mulf %41, %43 : vector<128x32xf32>
    %c0_14 = arith.constant 0 : index
    %c0_15 = arith.constant 0 : index
    %45 = vector.load %arg7[%c0_14, %c0_15] : memref<1x32xf32, #tpu.memory_space<vmem>>, vector<1x32xf32>
    %46 = vector.broadcast %45 : vector<1x32xf32> to vector<128x32xf32>
    %47 = arith.addf %44, %46 : vector<128x32xf32>
    %cst_16 = arith.constant 0.000000e+00 : f32
    %48 = vector.shape_cast %13 : vector<128x1xi1> to vector<128x1xi1>
    %49 = vector.broadcast %48 : vector<128x1xi1> to vector<128x32xi1>
    %50 = vector.broadcast %cst_16 : f32 to vector<128x32xf32>
    %51 = arith.select %49, %47, %50 : vector<128x32xi1>, vector<128x32xf32>
    %c0_17 = arith.constant 0 : index
    %c0_18 = arith.constant 0 : index
    %52 = vector.load %arg8[%c0_17, %c0_18] : memref<18x32xf32, #tpu.memory_space<vmem>>, vector<18x32xf32>
    %cst_19 = arith.constant dense<0.000000e+00> : vector<18x128xf32>
    %53 = tpu.matmul %52, %51, %cst_19 {dimension_numbers = #tpu.dot_dimension_numbers<[1], [1], [0], [0], [0, 0, 1, 0], [], []>} : vector<18x32xf32>, vector<128x32xf32>, vector<18x128xf32> -> vector<18x128xf32>
    %c0_20 = arith.constant 0 : index
    %c0_21 = arith.constant 0 : index
    %54 = vector.load %arg9[%c0_20, %c0_21] : memref<18x1xf32, #tpu.memory_space<vmem>>, vector<18x1xf32>
    %55 = vector.broadcast %54 : vector<18x1xf32> to vector<18x128xf32>
    %56 = arith.addf %53, %55 : vector<18x128xf32>
    %57 = vector.extract_strided_slice %56 {offsets = [0, 0], sizes = [16, 128], strides = [1, 1]} : vector<18x128xf32> to vector<16x128xf32>
    %58 = math.tanh %57 : vector<16x128xf32>
    %59 = vector.extract_strided_slice %56 {offsets = [16, 0], sizes = [2, 128], strides = [1, 1]} : vector<18x128xf32> to vector<2x128xf32>
    %c0_22 = arith.constant 0 : index
    %c0_23 = arith.constant 0 : index
    %60 = vector.load %arg12[%c0_22, %c0_23] : memref<2x128xf32, #tpu.memory_space<vmem>>, vector<2x128xf32>
    tpu.vector_store %arg12[%c0_22, %c0_23], %59 {strides = array<i32>} : memref<2x128xf32, #tpu.memory_space<vmem>>, vector<2x128xf32>,
    %c0_24 = arith.constant 0 : index
    %c0_25 = arith.constant 0 : index
    %61 = vector.load %arg10[%c0_24, %c0_25] : memref<1x16xf32, #tpu.memory_space<vmem>>, vector<1x16xf32>
    %cst_26 = arith.constant dense<0.000000e+00> : vector<1x128xf32>
    %62 = tpu.matmul %61, %58, %cst_26 {dimension_numbers = #tpu.dot_dimension_numbers<[1], [0], [0], [1], [0, 0, 1, 1], [], []>} : vector<1x16xf32>, vector<16x128xf32>, vector<1x128xf32> -> vector<1x128xf32>
    %c0_27 = arith.constant 0 : index
    %c0_28 = arith.constant 0 : index
    %63 = vector.load %arg11[%c0_27, %c0_28] : memref<1x1xf32, #tpu.memory_space<vmem>>, vector<1x1xf32>
    %64 = vector.broadcast %63 : vector<1x1xf32> to vector<1x128xf32>
    %65 = arith.addf %62, %64 : vector<1x128xf32>
    %cst_29 = arith.constant -1.000000e+30 : f32
    %66 = vector.broadcast %cst_29 : f32 to vector<1x128xf32>
    %67 = arith.select %15, %65, %66 : vector<1x128xi1>, vector<1x128xf32>
    %c0_30 = arith.constant 0 : index
    %c0_31 = arith.constant 0 : index
    %c0_32 = arith.constant 0 : index
    %68 = vector.load %arg13[%c0_30, %c0_31, %c0_32] : memref<1x1x1xf32, #tpu.memory_space<vmem>>, vector<1x1x1xf32>
    %69 = vector.shape_cast %68 : vector<1x1x1xf32> to vector<1x1xf32>
    %cst_33 = arith.constant dense<0xFF800000> : vector<1xf32>
    %70 = vector.multi_reduction <maximumf>, %67, %cst_33 [1] : vector<1x128xf32> to vector<1xf32>
    %71 = vector.shape_cast %70 : vector<1xf32> to vector<1x1xf32>
    %72 = arith.maximumf %69, %71 : vector<1x1xf32>
    %73 = arith.subf %69, %72 : vector<1x1xf32>
    %74 = math.exp %73 : vector<1x1xf32>
    %75 = vector.broadcast %72 : vector<1x1xf32> to vector<1x128xf32>
    %76 = arith.subf %67, %75 : vector<1x128xf32>
    %77 = math.exp %76 : vector<1x128xf32>
    %c0_34 = arith.constant 0 : index
    %c0_35 = arith.constant 0 : index
    %78 = vector.load %arg3[%c0_34, %c0_35] : memref<1x128xf32, #tpu.memory_space<vmem>>, vector<1x128xf32>
    %cst_36 = arith.constant 0.000000e+00 : f32
    %79 = vector.broadcast %cst_36 : f32 to vector<1x128xf32>
    %80 = arith.select %15, %78, %79 : vector<1x128xi1>, vector<1x128xf32>
    %81 = arith.mulf %77, %80 : vector<1x128xf32>
    %c0_37 = arith.constant 0 : index
    %c0_38 = arith.constant 0 : index
    %c0_39 = arith.constant 0 : index
    %82 = vector.load %arg14[%c0_37, %c0_38, %c0_39] : memref<1x1x1xf32, #tpu.memory_space<vmem>>, vector<1x1x1xf32>
    %83 = vector.shape_cast %82 : vector<1x1x1xf32> to vector<1x1xf32>
    %84 = arith.mulf %83, %74 : vector<1x1xf32>
    %cst_40 = arith.constant dense<0.000000e+00> : vector<1xf32>
    %85 = vector.multi_reduction <add>, %77, %cst_40 [1] : vector<1x128xf32> to vector<1xf32>
    %86 = vector.shape_cast %85 : vector<1xf32> to vector<1x1xf32>
    %87 = arith.addf %84, %86 : vector<1x1xf32>
    %c0_41 = arith.constant 0 : index
    %c0_42 = arith.constant 0 : index
    %c0_43 = arith.constant 0 : index
    %88 = vector.load %arg14[%c0_41, %c0_42, %c0_43] : memref<1x1x1xf32, #tpu.memory_space<vmem>>, vector<1x1x1xf32>
    %89 = vector.shape_cast %88 : vector<1x1x1xf32> to vector<1x1xf32>
    %90 = vector.shape_cast %87 : vector<1x1xf32> to vector<1x1x1xf32>
    tpu.vector_store %arg14[%c0_41, %c0_42, %c0_43], %90 {strides = array<i32>} : memref<1x1x1xf32, #tpu.memory_space<vmem>>, vector<1x1x1xf32>,
    %c0_44 = arith.constant 0 : index
    %c0_45 = arith.constant 0 : index
    %c0_46 = arith.constant 0 : index
    %91 = vector.load %arg15[%c0_44, %c0_45, %c0_46] : memref<1x1x32xf32, #tpu.memory_space<vmem>>, vector<1x1x32xf32>
    %92 = vector.shape_cast %91 : vector<1x1x32xf32> to vector<1x32xf32>
    %93 = vector.broadcast %74 : vector<1x1xf32> to vector<1x32xf32>
    %94 = arith.mulf %92, %93 : vector<1x32xf32>
    %cst_47 = arith.constant dense<0.000000e+00> : vector<1x32xf32>
    %95 = tpu.matmul %81, %51, %cst_47 {dimension_numbers = #tpu.dot_dimension_numbers<[1], [0], [0], [1], [0, 0, 1, 1], [], []>} : vector<1x128xf32>, vector<128x32xf32>, vector<1x32xf32> -> vector<1x32xf32>
    %96 = arith.addf %94, %95 : vector<1x32xf32>
    %c0_48 = arith.constant 0 : index
    %c0_49 = arith.constant 0 : index
    %c0_50 = arith.constant 0 : index
    %97 = vector.load %arg15[%c0_48, %c0_49, %c0_50] : memref<1x1x32xf32, #tpu.memory_space<vmem>>, vector<1x1x32xf32>
    %98 = vector.shape_cast %97 : vector<1x1x32xf32> to vector<1x32xf32>
    %99 = vector.shape_cast %96 : vector<1x32xf32> to vector<1x1x32xf32>
    tpu.vector_store %arg15[%c0_48, %c0_49, %c0_50], %99 {strides = array<i32>} : memref<1x1x32xf32, #tpu.memory_space<vmem>>, vector<1x1x32xf32>,
    %c0_51 = arith.constant 0 : index
    %c0_52 = arith.constant 0 : index
    %c0_53 = arith.constant 0 : index
    %100 = vector.load %arg13[%c0_51, %c0_52, %c0_53] : memref<1x1x1xf32, #tpu.memory_space<vmem>>, vector<1x1x1xf32>
    %101 = vector.shape_cast %100 : vector<1x1x1xf32> to vector<1x1xf32>
    %102 = vector.shape_cast %72 : vector<1x1xf32> to vector<1x1x1xf32>
    tpu.vector_store %arg13[%c0_51, %c0_52, %c0_53], %102 {strides = array<i32>} : memref<1x1x1xf32, #tpu.memory_space<vmem>>, vector<1x1x1xf32>,
    return
  }
  func.func @transform_0(%arg0: i32, %arg1: i32) -> (i32, i32) {
    %c1_i32 = arith.constant 1 : i32
    %0 = arith.muli %arg0, %c1_i32 : i32
    %1 = arith.addi %0, %arg1 : i32
    %c0_i32 = arith.constant 0 : i32
    %2 = arith.minsi %1, %c0_i32 : i32
    %c0_i32_0 = arith.constant 0 : i32
    %c0_i32_1 = arith.constant 0 : i32
    return %2, %c0_i32_0 : i32, i32
  }
  func.func @transform_1(%arg0: i32, %arg1: i32) -> (i32, i32) {
    %c1_i32 = arith.constant 1 : i32
    %0 = arith.muli %arg0, %c1_i32 : i32
    %1 = arith.addi %0, %arg1 : i32
    %c0_i32 = arith.constant 0 : i32
    %2 = arith.minsi %1, %c0_i32 : i32
    %c0_i32_0 = arith.constant 0 : i32
    %c0_i32_1 = arith.constant 0 : i32
    return %c0_i32_0, %2 : i32, i32
  }
  func.func @transform_2(%arg0: i32, %arg1: i32) -> (i32, i32) {
    %c0_i32 = arith.constant 0 : i32
    %c0_i32_0 = arith.constant 0 : i32
    %c0_i32_1 = arith.constant 0 : i32
    return %c0_i32, %c0_i32_0 : i32, i32
  }
  func.func @transform_3(%arg0: i32, %arg1: i32) -> (i32, i32) {
    %c0_i32 = arith.constant 0 : i32
    %c0_i32_0 = arith.constant 0 : i32
    %c0_i32_1 = arith.constant 0 : i32
    return %c0_i32, %c0_i32_0 : i32, i32
  }
  func.func @transform_4(%arg0: i32, %arg1: i32) -> (i32, i32) {
    %c0_i32 = arith.constant 0 : i32
    %c0_i32_0 = arith.constant 0 : i32
    %c0_i32_1 = arith.constant 0 : i32
    return %c0_i32, %c0_i32_0 : i32, i32
  }
  func.func @transform_5(%arg0: i32, %arg1: i32) -> (i32, i32) {
    %c0_i32 = arith.constant 0 : i32
    %c0_i32_0 = arith.constant 0 : i32
    %c0_i32_1 = arith.constant 0 : i32
    return %c0_i32, %c0_i32_0 : i32, i32
  }
  func.func @transform_6(%arg0: i32, %arg1: i32) -> (i32, i32) {
    %c0_i32 = arith.constant 0 : i32
    %c0_i32_0 = arith.constant 0 : i32
    %c0_i32_1 = arith.constant 0 : i32
    return %c0_i32, %c0_i32_0 : i32, i32
  }
  func.func @transform_7(%arg0: i32, %arg1: i32) -> (i32, i32) {
    %c0_i32 = arith.constant 0 : i32
    %c0_i32_0 = arith.constant 0 : i32
    %c0_i32_1 = arith.constant 0 : i32
    return %c0_i32, %c0_i32_0 : i32, i32
  }
  func.func @transform_8(%arg0: i32, %arg1: i32) -> (i32, i32) {
    %c0_i32 = arith.constant 0 : i32
    %c0_i32_0 = arith.constant 0 : i32
    %c0_i32_1 = arith.constant 0 : i32
    return %c0_i32, %c0_i32_0 : i32, i32
  }
  func.func @transform_9(%arg0: i32, %arg1: i32) -> (i32, i32) {
    %c0_i32 = arith.constant 0 : i32
    %c0_i32_0 = arith.constant 0 : i32
    %c0_i32_1 = arith.constant 0 : i32
    return %c0_i32, %c0_i32_0 : i32, i32
  }
  func.func @transform_10(%arg0: i32, %arg1: i32) -> (i32, i32) {
    %c1_i32 = arith.constant 1 : i32
    %0 = arith.muli %arg0, %c1_i32 : i32
    %1 = arith.addi %0, %arg1 : i32
    %c0_i32 = arith.constant 0 : i32
    %c0_i32_0 = arith.constant 0 : i32
    return %c0_i32, %1 : i32, i32
  }
  func.func @transform_11(%arg0: i32, %arg1: i32) -> (i32, i32, i32) {
    %c0_i32 = arith.constant 0 : i32
    %c0_i32_0 = arith.constant 0 : i32
    %c0_i32_1 = arith.constant 0 : i32
    return %arg0, %c0_i32, %c0_i32_0 : i32, i32, i32
  }
  func.func @transform_12(%arg0: i32, %arg1: i32) -> (i32, i32, i32) {
    %c0_i32 = arith.constant 0 : i32
    %c0_i32_0 = arith.constant 0 : i32
    %c0_i32_1 = arith.constant 0 : i32
    return %arg0, %c0_i32, %c0_i32_0 : i32, i32, i32
  }
  func.func @transform_13(%arg0: i32, %arg1: i32) -> (i32, i32, i32) {
    %c0_i32 = arith.constant 0 : i32
    %c0_i32_0 = arith.constant 0 : i32
    %c0_i32_1 = arith.constant 0 : i32
    return %arg0, %c0_i32, %c0_i32_0 : i32, i32, i32
  }
}

</mosaic_0001>

<bundles_post_ra>
// kernel: tpu_custom_call.1
= control target key start
LH: loop header
LB: loop body
LE: loop exit
PB: predicated region body
PF: predicated region fallthrough
CT: control target
= control target key end

     0   :  { %s1643_s0 = inlined_call_operand.vmem [shape: f32[128,32], index: 0, kind: input, shape index: {}]   ;;  %s1644_s1 = inlined_call_operand.vmem [shape: f32[1,128], index: 1, kind: input, shape index: {}]   ;;  %s1645_s2 = inlined_call_operand.vmem [shape: f32[32,32], index: 2, kind: input, shape index: {}]   ;;  %s1646_s3 = inlined_call_operand.vmem [shape: f32[1,32], index: 3, kind: input, shape index: {}]   ;;  %s1647_s4 = inlined_call_operand.vmem [shape: f32[1,32], index: 4, kind: input, shape index: {}]   ;;  %s1648_s5 = inlined_call_operand.vmem [shape: f32[1,32], index: 5, kind: input, shape index: {}]   ;;  %s1649_s6 = inlined_call_operand.vmem [shape: f32[18,32], index: 6, kind: input, shape index: {}]   ;;  %s1650_s7 = inlined_call_operand.vmem [shape: f32[18,1], index: 7, kind: input, shape index: {}]   ;;  %s1651_s8 = inlined_call_operand.vmem [shape: f32[1,16], index: 8, kind: input, shape index: {}]   ;;  %s1652_s9 = inlined_call_operand.<no memory space> [shape: f32[1,1], index: 9, kind: input, shape index: {}]   ;;  %s1653_s10 = inlined_call_operand.hbm [shape: f32[2,128], index: 10, kind: output, shape index: {0}]   ;;  %s1654_s11 = inlined_call_operand.hbm [shape: f32[1,1,1], index: 11, kind: output, shape index: {1}]   ;;  %s1655_s12 = inlined_call_operand.hbm [shape: f32[1,1,1], index: 12, kind: output, shape index: {2}]   ;;  %s1656_s13 = inlined_call_operand.hbm [shape: f32[1,1,32], index: 13, kind: output, shape index: {3}]  }
   0x1   :  { %v19_v0 = vstv %s1652_s9 }
   0x2   :  { %20 = vst [vmem:[#allocation2] sm:$0x1] %v19_v0 }
   0x3   :  { %21 = vsyncpa [#allocation4], 0 }
   0x4   :  { %22 = vsyncpa [#allocation6], 0  ;;  %v182_v1 = vld [vmem:[%s1645_s2] sm:$0xff]  ;;  %v183_v2 = vld [vmem:[%s1645_s2 + $0x8] sm:$0xff]  ;;  %vm193_vm0 = vcmask 261120  }
   0x5   :  { %v184_v3 = vld [vmem:[%s1645_s2 + $0x10] sm:$0xff]  ;;  %v1229_v4 = vpack.c.bf16 %v183_v2, %v182_v1  ;;  %v185_v5 = vld [vmem:[%s1645_s2 + $0x18] sm:$0xff]  ;;  %v166_v6 = vld [vmem:[%s1643_s0] sm:$0xff] }
   0x6   :  { %v1233_v7 = vpack.c.bf16 %v185_v5, %v184_v3  ;;  %1182 = vmatprep.mubr.msk.f32.mxu0 %vm193_vm0, %v166_v6 }
   0x7   :  { %23 = vsyncpa [#allocation9], 0  ;;  %1230 = vmatprep.subr.bf16.mxu0 %v1229_v4  ;;  %1240 = vmatprep.subr.bf16.mxu1 %v1229_v4  ;;  %v167_v8 = vld [vmem:[%s1643_s0 + $0x8] sm:$0xff]  ;;  %v1121_v9 = vld [vmem:[%s1646_s3] ss:$0 sm:$0xff]  ;;  %v1359_v21 = vmov 0.0   ;;  %v146_v55 = vlaneseq }
   0x8   :  { %1232 = vmatpush3.bf16.msra.mxu0 %v1229_v4  ;;  %1242 = vmatpush3.bf16.msra.mxu1 %v1229_v4  ;;  %v180_v19 = vld [vmem:[%s1643_s0 + $0x70] sm:$0xff]  ;;  %v181_v20 = vld [vmem:[%s1643_s0 + $0x78] sm:$0xff]  ;;  %vm1360_vm1 = vmmov 0   ;;  %v693_v22 = vld [vmem:[%s1650_s7] sm:$0xff]  ;;  %v1361_v23 = vmov 0   ;;  %v1362_v39 = vmov 0.0|0.0  }
   0x9   :  { %1234 = vmatprep.subr.bf16.mxu0 %v1233_v7  ;;  %1241 = vmatprep.subr.bf16.mxu1 %v1233_v7  ;;  %v694_v24 = vld [vmem:[%s1650_s7 + $0x8] sm:$0xff]  ;;  %v1138_v29 = vld [vmem:[%s1647_s4] ss:$0 sm:$0xff]  ;;  %v692_v38 = vld [vmem:[%s1649_s6 + $0x10] sm:$0x3]  ;;  %vm862_vm2 = vcmask 130048  }
   0xa   :  { %1203 = vmatprep.mubr.msk.f32.mxu1 %vm193_vm0, %v180_v19  ;;  %1253 = vset.pattern.permute.xlu1 %v1361_v23  ;;  %v1139_v31 = vld [vmem:[%s1648_s5] ss:$0 sm:$0xff]  ;;  %v691_v35 = vld [vmem:[%s1649_s6 + $0x8] sm:$0xff]  ;;  %v859_v56 = vshrl.u32 %v146_v55, 7  ;;  %v147_v59 = vand.u32 127, %v146_v55  ;;  %vm938_vm4 = vcmask 1040384  }
   0xb   :  { %1254 = vset.pattern.permute.xlu0 %v1361_v23  ;;  %698 = vperm.xlu1 %1253, %v693_v22   ;;  %v690_v34 = vld [vmem:[%s1649_s6] sm:$0xff]  ;;  %vm105_vm5 = vcmask 0   ;;  %v1363_v2 = vmov -1e+30   ;;  %v168_v6 = vld [vmem:[%s1643_s0 + $0x10] sm:$0xff]  ;;  %vm108_vm6 = vcmask 253952  }
   0xc   :  { %1236 = vmatpush3.bf16.msra.mxu0 %v1233_v7  ;;  %1243 = vmatpush3.bf16.msra.mxu1 %v1233_v7  ;;  %v852_v40 = vld [vmem:[#allocation2] sm:$0x1]  ;;  %v1516_v57 = vsub.s32 0, %v859_v56  ;;  %vm165_vm3 = vcmp.lt.s32.totalorder %v147_v59, 8  ;;  %106 = vst.msk [vmem:[#allocation5] sm:$0x1] %vm105_vm5, %v1363_v2 }
   0xd   :  { %1206 = vmatprep.subr.mxu1 %v1359_v21  ;;  %v851_v52 = vld [vmem:[%s1651_s8] sm:$0x1]  ;;  %107 = vst.msk [vmem:[#allocation7] sm:$0x1] %vm105_vm5, %v1359_v21  ;;  %v177_v19 = vld [vmem:[%s1643_s0 + $0x58] sm:$0xff]  ;;  %s1365_s21 = smov [#allocation3]  }
   0xe   :  { %109 = vst.msk [vmem:[#allocation8] sm:$0x1] %vm108_vm6, %v1359_v21  ;;  %s1063_s22 = sshll.u32 %s1365_s21, 4  ;;  %s1064_s22 = int_to_ptr.vmem [resolvable:$true] %s1063_s22 }
   0xf   :  { %1183 = vmatmul.mubr.msk.f32.vlgmr.msra.gmra.mrb[0].mxu0 %vm193_vm0, %v167_v8  ;;  %1204 = vmatmul.mubr.msk.f32.vlgmr.msra.gmra.mrb[0].mxu1 %vm193_vm0, %v181_v20  ;;  %v169_v8 = vld [vmem:[%s1643_s0 + $0x18] sm:$0xff]  ;;  %v178_v20 = vld [vmem:[%s1643_s0 + $0x60] sm:$0xff] }
  0x10   :  { %1208 = vmatprep.mubr.msk.f32.mxu1 %vm1360_vm1, %v1359_v21  ;;  %703 = vperm.xlu1 %1253, %v694_v24  }
  0x11   :  { %1185 = vmatprep.mubr.msk.f32.mxu0 %vm193_vm0, %v168_v6 }
  0x13   :  { %v937_v3 = vld [vmem:[#allocation5] sm:$0x1]  ;;  %1186 = vmatmul.mubr.msk.f32.gmra.mrb[2].mxu0 %vm193_vm0, %v169_v8 }
  0x8a   :  { %v699_v41 = vpop.permute.xlu1 %698 }
  0x8f   :  { %v704_v45 = vpop.permute.xlu1 %703 }
  0xe2   :  { %v1184_v10 = vpop.f32.mrb[0].mxu0  ;;  %v1205_v36 = vpop.f32.mrb[0].mxu1 }
  0xe3   :  { %v308_v11 = vpop.f32.mrb[1].mxu0  ;;  %v378_v37 = vpop.f32.mrb[1].mxu1  ;;  %v170_v10 = vld [vmem:[%s1643_s0 + $0x20] sm:$0xff] }
  0xe4   :  { %v309_v12 = vadd.f32 %v1121_v9, %v308_v11  ;;  %1188 = vmatprep.mubr.msk.f32.mxu0 %vm193_vm0, %v170_v10  ;;  %v171_v11 = vld [vmem:[%s1643_s0 + $0x28] sm:$0xff] }
  0xe5   :  { %1189 = vmatmul.mubr.msk.f32.gmra.mrb[4].mxu0 %vm193_vm0, %v171_v11 }
  0xe6   :  { %v387_v13 = vsel %vm193_vm0, %v309_v12, 0.0 }
  0xe7   :  { %388 = vadd.xlane.f32.xlu0 %v387_v13  ;;  %v173_v13 = vld [vmem:[%s1643_s0 + $0x38] sm:$0xff] }
 0x174   :  { %v389_v14 = vpop.xlane.xlu0 %388 }
 0x175   :  { %v436_v15 = vmul.f32 0.03125, %v389_v14  ;;  %v174_v14 = vld [vmem:[%s1643_s0 + $0x40] sm:$0xff] }
 0x177   :  { %v452_v16 = vsub.f32 %v309_v12, %v436_v15  ;;  %v172_v12 = vld [vmem:[%s1643_s0 + $0x30] sm:$0xff]  ;;  %v175_v15 = vld [vmem:[%s1643_s0 + $0x48] sm:$0xff] }
 0x178   :  { %1191 = vmatprep.mubr.msk.f32.mxu0 %vm193_vm0, %v172_v12 }
 0x179   :  { %v468_v17 = vmul.f32 %v452_v16, %v452_v16  ;;  %1192 = vmatmul.mubr.msk.f32.gmra.mrb[6].mxu0 %vm193_vm0, %v173_v13 }
 0x17a   :  { %1194 = vmatprep.mubr.msk.f32.mxu0 %vm193_vm0, %v174_v14 }
 0x17b   :  { %v484_v18 = vsel %vm193_vm0, %v468_v17, 0.0  ;;  %v176_v17 = vld [vmem:[%s1643_s0 + $0x50] sm:$0xff] }
 0x17c   :  { %485 = vadd.xlane.f32.xlu0 %v484_v18  ;;  %v695_v18 = vld [vmem:[%s1650_s7 + $0x10] sm:$0x3] }
 0x17d   :  { %1195 = vmatmul.mubr.msk.f32.gmra.mrb[8].mxu0 %vm193_vm0, %v175_v15 }
 0x17e   :  { %1197 = vmatprep.mubr.msk.f32.mxu0 %vm193_vm0, %v176_v17 }
 0x181   :  { %1198 = vmatmul.mubr.msk.f32.gmra.mrb[10].mxu0 %vm193_vm0, %v177_v19 }
 0x182   :  { %1200 = vmatprep.mubr.msk.f32.mxu0 %vm193_vm0, %v178_v20 }
 0x192   :  { %855 = vperm.xlu0 %1254, %v852_v40  }
 0x209   :  { %v486_v25 = vpop.xlane.xlu0 %485 }
 0x20a   :  { %v532_v26 = vmul.f32 0.03125, %v486_v25 }
 0x20c   :  { %v548_v27 = vadd.f32 1e-05, %v532_v26  ;;  %v958_v26 = vld [vmem:[%s1644_s1] sm:$0x1] }
 0x20e   :  { %1255 = vrsqrt.f32 %v548_v27  ;;  %v959_v27 = vsel %vm165_vm3, %v958_v26, 0.0 }
 0x211   :  { %v856_v58 = vpop.permute.xlu0 %855 }
 0x212   :  { %v861_v60 = vrot.slane %v856_v58, %v1516_v57 }
 0x218   :  { %v1256_v28 = vpop.eup %1255 }
 0x219   :  { %v580_v30 = vmul.f32 %v1256_v28, %v452_v16 }
 0x21b   :  { %v603_v32 = vmul.f32 %v1138_v29, %v580_v30 }
 0x21d   :  { %v626_v33 = vadd.f32 %v1139_v31, %v603_v32 }
 0x21f   :  { %1207 = vmatpush3.xpose.msk.msra.mxu1 %vm193_vm0, %v626_v33 }
 0x220   :  { %1237 = vmatprep.subr.bf16.mxu1 %v1362_v39 }
 0x222   :  { %1209 = vmatmul.mubr.msk.f32.vlgmr.msra.gmra.mrb[2].mxu1 %vm193_vm0, %v690_v34  ;;  %v1187_v34 = vpop.f32.mrb[2].mxu0 }
 0x223   :  { %1211 = vmatprep.mubr.msk.f32.mxu1 %vm1360_vm1, %v1359_v21 }
 0x226   :  { %1212 = vmatmul.mubr.msk.f32.gmra.mrb[4].mxu1 %vm193_vm0, %v691_v35  ;;  %v318_v35 = vpop.f32.mrb[3].mxu0 }
 0x227   :  { %1214 = vmatprep.mubr.msk.f32.mxu1 %vm1360_vm1, %v1359_v21  ;;  %v1190_v36 = vpop.f32.mrb[4].mxu0 }
 0x228   :  { %v328_v37 = vpop.f32.mrb[5].mxu0 }
 0x22a   :  { %1215 = vmatmul.mubr.msk.f32.gmra.mrb[6].mxu1 %vm193_vm0, %v692_v38 }
 0x22b   :  { %1221 = vmatprep.mubr.msk.f32.mxu1 %vm1360_vm1, %v1359_v21 }
 0x24c   :  { %v1193_v38 = vpop.f32.mrb[6].mxu0 }
 0x24d   :  { %v338_v39 = vpop.f32.mrb[7].mxu0 }
 0x250   :  { %v1196_v40 = vpop.f32.mrb[8].mxu0 }
 0x2f5   :  { %v834_v42 = vpop.f32.mrb[2].mxu1 }
 0x2f6   :  { %v1210_v43 = vpop.f32.mrb[3].mxu1  ;;  %v835_v44 = vadd.f32 %v834_v42, %v699_v41  ;;  %v348_v41 = vpop.f32.mrb[9].mxu0 }
 0x2f7   :  { %v1199_v42 = vpop.f32.mrb[10].mxu0 }
 0x2f8   :  { %1257 = vtanh.f32 %v835_v44  ;;  %v358_v43 = vpop.f32.mrb[11].mxu0 }
 0x2f9   :  { %v839_v46 = vpop.f32.mrb[4].mxu1 }
 0x2fa   :  { %v840_v47 = vadd.f32 %v839_v46, %v704_v45  ;;  %v1213_v48 = vpop.f32.mrb[5].mxu1 }
 0x2fc   :  { %1259 = vtanh.f32 %v840_v47 }
 0x2fd   :  { %v1514_v53 = vpop.f32.mrb[6].mxu1 }
 0x2fe   :  { %v1216_v54 = vpop.f32.mrb[7].mxu1 }
 0x302   :  { %v1258_v49 = vpop.eup %1257 }
 0x306   :  { %v1260_v50 = vpop.eup %1259 }
 0x307   :  { %v1238_v51 = vpack.c.bf16 %v1260_v50, %v1258_v49 }
 0x309   :  { %1239 = vmatpush3.bf16.msra.mxu1 %v1238_v51 }
 0x30a   :  { %1224 = vmatprep.subr.mxu1 %v1359_v21 }
 0x30c   :  { %1222 = vmatmul.mubr.msk.f32.vlgmr.msra.gmra.mrb[8].mxu1 %vm862_vm2, %v851_v52 }
 0x30d   :  { %1225 = vmatpush3.msra.mxu1 %v626_v33  ;;  %1226 = vmatprep.mubr.msk.f32.mxu1 %vm1360_vm1, %v1359_v21  ;;  %v179_v21 = vld [vmem:[%s1643_s0 + $0x68] sm:$0xff]  ;;  %s1364_s0 = smov [#allocation5]  }
 0x30e   :  { %1201 = vmatmul.mubr.msk.f32.gmra.mrb[12].mxu0 %vm193_vm0, %v179_v21  ;;  %s1073_s1 = sshll.u32 %s1364_s0, 4  ;;  %s1074_s1 = int_to_ptr.vmem [resolvable:$true] %s1073_s1 }
 0x30f   :  { %s1265_s23 = scalar_lea.vmem %s1074_s1, 16  ;;  %s1269_s24 = scalar_lea.vmem %s1074_s1, 32 }
 0x310   :  { %p1266_p0 = scmp.ne.s32.totalorder %s1074_s1, %s1265_s23  ;;  %p1270_p1 = scmp.lt.s32.totalorder %s1074_s1, %s1074_s1 }
 0x311   :  { %p1271_p2 = scmp.lt.s32.totalorder %s1269_s24, %s1265_s23 }
 0x313   :  { %p1272_p3 = por %p1271_p2, %p1270_p1 }
 0x315   :  { %p1273_p4 = pnand %p1272_p3, %p1266_p0 }
 0x3df   :  { %v932_v61 = vpop.f32.mrb[8].mxu1 }
 0x3e0   :  { %v933_v62 = vadd.f32 %v932_v61, %v861_v60  ;;  %v1223_v63 = vpop.f32.mrb[9].mxu1 }
 0x3e1   :  { %v1202_v44 = vpop.f32.mrb[12].mxu0 }
 0x3e2   :  { %v936_v0 = vsel %vm165_vm3, %v933_v62, -1e+30  ;;  %v368_v45 = vpop.f32.mrb[13].mxu0 }
 0x3e3   :  { %v939_v1 = vsel %vm938_vm4, %v936_v0, -inf }
 0x3e4   :  { %940 = vmax.xlane.f32.xlu1 %v939_v1 }
 0x471   :  { %v941_v4 = vpop.xlane.xlu1 %940 }
 0x472   :  { %v942_v5 = vmax.f32 %v937_v3, %v941_v4 }
 0x474   :  { %v943_v7 = vsub.f32 %v937_v3, %v942_v5  ;;  %1053 = vst.msk [vmem:[#allocation5] sm:$0x1] %vm105_vm5, %v942_v5  ;;  %948 = vperm.xlu1 %1253, %v942_v5  }
 0x476   :  { %v944_v9 = vmul.f32 1.442695, %v943_v7 }
 0x478   :  { %1261 = vpow2.f32 %v944_v9 }
 0x482   :  { %v1559_v16 = vpop.eup %1261 }
 0x483   :  { %972 = vperm.xlu1 %1253, %v1559_v16  }
 0x487   :  { %708 = vperm.xlu1 %1253, %v695_v18  }
 0x4f3   :  { %v949_v22 = vpop.permute.xlu1 %948 }
 0x4f4   :  { %v954_v23 = vrot.slane %v949_v22, %v1516_v57 }
 0x4f6   :  { %v955_v24 = vsub.f32 %v936_v0, %v954_v23 }
 0x4f8   :  { %v956_v25 = vmul.f32 1.442695, %v955_v24 }
 0x4fa   :  { %1263 = vpow2.f32 %v956_v25 }
 0x502   :  { %v1586_v28 = vpop.permute.xlu1 %972 }
 0x504   :  { %v1264_v29 = vpop.eup %1263 }
 0x505   :  { %v963_v30 = vsel %vm938_vm4, %v1264_v29, 0.0  ;;  %v960_v31 = vmul.f32 %v1264_v29, %v959_v27 }
 0x506   :  { %964 = vadd.xlane.f32.xlu0 %v963_v30  ;;  %v709_v32 = vpop.permute.xlu1 %708 }
 0x507   :  { %v845_v33 = vadd.f32 %v1514_v53, %v709_v32  ;;  %1227 = vmatmul.mubr.f32.vlgmr.msra.gmra.mrb[10].mxu1 %v960_v31 }
 0x509   :  { %850 = vst [vmem:[#allocation3] sm:$0x3] %v845_v33 }
 0x50a   :  { %1276 = shalt.err (!%p1273_p4)
}
 0x50b   :  { %s1277_s26 = scalar_lea.hbm %s1654_s11, 16 }
 0x50c   :  { %p1278_p5 = scmp.ne.s32.totalorder %s1654_s11, %s1277_s26  ;;  %p1281_p6 = scmp.lt.u32.totalorder %s1277_s26, %s1654_s11 }
 0x50e   :  { %p1283_p7 = pnand %p1281_p6, %p1278_p5 }
 0x510   :  { %1286 = shalt.err (!%p1283_p7)
}
 0x511   :  { %1076 = dma.vmem_to_hbm [thread:$0]  %s1074_s1, 16, %s1654_s11, [#allocation6]  }
 0x512   :  { %s1287_s16 = scalar_lea.vmem %s1064_s22, 32  ;;  %p1292_p9 = scmp.lt.s32.totalorder %s1064_s22, %s1064_s22 }
 0x513   :  { %p1288_p8 = scmp.ne.s32.totalorder %s1064_s22, %s1287_s16  ;;  %p1293_p10 = scmp.lt.s32.totalorder %s1287_s16, %s1287_s16 }
 0x515   :  { %p1294_p11 = por %p1293_p10, %p1292_p9 }
 0x517   :  { %p1295_p12 = pnand %p1294_p11, %p1288_p8 }
 0x519   :  { %1298 = shalt.err (!%p1295_p12)
}
 0x51a   :  { %s1299_s4 = scalar_lea.hbm %s1653_s10, 32 }
 0x51b   :  { %p1300_p13 = scmp.ne.s32.totalorder %s1653_s10, %s1299_s4  ;;  %p1303_p0 = scmp.lt.u32.totalorder %s1299_s4, %s1653_s10 }
 0x51d   :  { %p1305_p1 = pnand %p1303_p0, %p1300_p13 }
 0x51f   :  { %1308 = shalt.err (!%p1305_p1)
}
 0x520   :  { %1066 = dma.vmem_to_hbm [thread:$0]  %s1064_s22, 32, %s1653_s10, [#allocation4]   ;;  %v961_v46 = vld [vmem:[#allocation7] sm:$0x1] }
 0x521   :  { %s1366_s20 = smov [#allocation7]   ;;  %v962_v47 = vmul.f32 %v1559_v16, %v961_v46 }
 0x522   :  { %s1083_s7 = sshll.u32 %s1366_s20, 4  ;;  %s1084_s7 = int_to_ptr.vmem [resolvable:$true] %s1083_s7 }
 0x523   :  { %s1309_s2 = scalar_lea.vmem %s1084_s7, 16  ;;  %s1313_s0 = scalar_lea.vmem %s1084_s7, 32 }
 0x524   :  { %p1310_p2 = scmp.ne.s32.totalorder %s1084_s7, %s1309_s2  ;;  %p1314_p3 = scmp.lt.s32.totalorder %s1084_s7, %s1084_s7 }
 0x525   :  { %p1315_p4 = scmp.lt.s32.totalorder %s1313_s0, %s1309_s2 }
 0x527   :  { %p1316_p5 = por %p1315_p4, %p1314_p3 }
 0x529   :  { %p1317_p6 = pnand %p1316_p5, %p1310_p2 }
 0x593   :  { %v965_v48 = vpop.xlane.xlu0 %964 }
 0x594   :  { %v966_v49 = vadd.f32 %v965_v48, %v962_v47 }
 0x596   :  { %968 = vst.msk [vmem:[#allocation7] sm:$0x1] %vm105_vm5, %v966_v49 }
 0x597   :  { %1320 = shalt.err (!%p1317_p6)
}
 0x598   :  { %s1321_s21 = scalar_lea.hbm %s1655_s12, 16 }
 0x599   :  { %p1322_p7 = scmp.ne.s32.totalorder %s1655_s12, %s1321_s21  ;;  %p1325_p8 = scmp.lt.u32.totalorder %s1321_s21, %s1655_s12 }
 0x59b   :  { %p1327_p9 = pnand %p1325_p8, %p1322_p7 }
 0x59d   :  { %1330 = shalt.err (!%p1327_p9)
}
 0x59e   :  { %1086 = dma.vmem_to_hbm [thread:$0]  %s1084_s7, 16, %s1655_s12, [#allocation6]   ;;  %v978_v50 = vrot.slane %v1586_v28, %v1516_v57  ;;  %v969_v51 = vld [vmem:[#allocation8] sm:$0x1] }
 0x59f   :  { %s1367_s27 = smov [#allocation8]  }
 0x5a0   :  { %s1093_s28 = sshll.u32 %s1367_s27, 4  ;;  %v979_v52 = vmul.f32 %v978_v50, %v969_v51  ;;  %s1094_s28 = int_to_ptr.vmem [resolvable:$true] %s1093_s28 }
 0x5a1   :  { %s1331_s29 = scalar_lea.vmem %s1094_s28, 16  ;;  %s1335_s30 = scalar_lea.vmem %s1094_s28, 32 }
 0x5a2   :  { %p1332_p10 = scmp.ne.s32.totalorder %s1094_s28, %s1331_s29  ;;  %p1336_p11 = scmp.lt.s32.totalorder %s1094_s28, %s1094_s28 }
 0x5a3   :  { %p1337_p12 = scmp.lt.s32.totalorder %s1335_s30, %s1331_s29 }
 0x5a5   :  { %p1338_p13 = por %p1337_p12, %p1336_p11 }
 0x5a7   :  { %p1339_p0 = pnand %p1338_p13, %p1332_p10 }
 0x5da   :  { %v1046_v53 = vpop.f32.mrb[10].mxu1 }
 0x5db   :  { %v1050_v54 = vadd.f32 %v1046_v53, %v979_v52  ;;  %v1228_v55 = vpop.f32.mrb[11].mxu1 }
 0x5dd   :  { %1052 = vst.msk [vmem:[#allocation8] sm:$0x1] %vm108_vm6, %v1050_v54 }
 0x5de   :  { %1342 = shalt.err (!%p1339_p0)
}
 0x5df   :  { %s1343_s15 = scalar_lea.hbm %s1656_s13, 16 }
 0x5e0   :  { %p1344_p1 = scmp.ne.s32.totalorder %s1656_s13, %s1343_s15  ;;  %p1347_p2 = scmp.lt.u32.totalorder %s1343_s15, %s1656_s13 }
 0x5e2   :  { %p1349_p3 = pnand %p1347_p2, %p1344_p1 }
 0x5e4   :  { %1352 = shalt.err (!%p1349_p3)
}
 0x5e5   :  { %1096 = dma.vmem_to_hbm [thread:$0]  %s1094_s28, 16, %s1656_s13, [#allocation9]  }
 0x5e6   :  { %1353 = dma.done.wait [#allocation4], 32  }
 0x5e7   :  { %1354 = vsyncadd [#allocation4], 4294967264 }
 0x5e8   :  { %1355 = dma.done.wait [#allocation6], 32  }
 0x5e9   :  { %1356 = vsyncadd [#allocation6], 4294967264 }
 0x5ea   :  { %1357 = dma.done.wait [#allocation9], 16  }
 0x5eb   :  { %1358 = vsyncadd [#allocation9], 4294967280 }
 0x5ec   :  { %1109 = vsyncpa [#allocation4], 1 }
 0x5ed   :  { %1110 = vsyncpa [#allocation6], 1 }
 0x5ee   :  { %1111 = vsyncpa [#allocation9], 1 }

</bundles_post_ra>
